<compile_context>
chip_gen: v7x
topology: tpu7x:2x2x1
jax: 0.10.0
libtpu: 0.0.40
codegen_flags: <defaults>
</compile_context>

<pallas_src>
import jax
import jax.numpy as jnp
import numpy as np
from jax.experimental import pallas as pl
from jax.experimental.pallas import tpu as pltpu

EPS = 1e-10          # eps used inside the CE log
SMOOTH_NR = 1e-5     # MONAI DiceLoss defaults
SMOOTH_DR = 1e-5
LANES = 128


def _make_kernel(n_class, tile_sub, ignore_index):
    lanes = LANES

    def kernel(pred_ref, tgt_ref, ce_ref, inter_ref, g_ref, p_ref,
               cnt_acc, slog_acc):
        b = pl.program_id(1)
        nb = pl.num_programs(1)

        @pl.when(b == 0)
        def _():
            cnt_acc[...] = jnp.zeros_like(cnt_acc)
            slog_acc[...] = jnp.zeros_like(slog_acc)

        tgt = tgt_ref[0]                                  # (T, 128) int32; -1 in padding

        inter_rows = []
        g_rows = []
        p_rows = []
        # n_class is small and static: unroll so every op is a clean 2-D
        # (TILE_SUB, 128) vreg-shaped tile.
        for c in range(n_class):
            pred_c = pred_ref[0, c]                       # (T, 128) softmax probs
            oh_c = (tgt == c).astype(jnp.float32)         # (T, 128) one-hot slice

            # CE factorization (matches the reference's cross-batch loop):
            #   -sum_{c,hw} (sum_b onehot[b,c,hw]) * (sum_b log(pred[b,c,hw]+eps))
            cnt_acc[c] = cnt_acc[c] + oh_c
            slog_acc[c] = slog_acc[c] + jnp.log(pred_c + EPS)

            # Dice partials for this (tile, b, c): reduce sublanes, keep lanes
            # (lane-dense stores; the wrapper finishes the reduction).
            inter_rows.append(jnp.sum(oh_c * pred_c, axis=0, keepdims=True))
            g_rows.append(jnp.sum(oh_c, axis=0, keepdims=True))
            p_rows.append(jnp.sum(pred_c, axis=0, keepdims=True))

        inter_ref[...] = jnp.concatenate(inter_rows, axis=0).reshape(
            1, 1, n_class, lanes)
        g_ref[...] = jnp.concatenate(g_rows, axis=0).reshape(1, 1, n_class, lanes)
        p_ref[...] = jnp.concatenate(p_rows, axis=0).reshape(1, 1, n_class, lanes)

        @pl.when(b == nb - 1)
        def _():
            cls_sum = None
            for c in range(n_class):
                if c == ignore_index:                     # static Python branch
                    continue
                term = cnt_acc[c] * slog_acc[c]           # (T, 128)
                cls_sum = term if cls_sum is None else cls_sum + term
            if cls_sum is None:                           # every class ignored
                cls_sum = jnp.zeros((tile_sub, lanes), jnp.float32)
            # per-tile CE partial, lane-dense (1, 128); final sum in wrapper.
            ce_ref[...] = jnp.sum(cls_sum, axis=0, keepdims=True).reshape(
                1, 1, lanes)

    return kernel


def dicece_soft_loss(pred_bnhw, target_b1hw, weight_ce=1.0, weight_dice=1.0,
                     ignore_index=-100):
    """pred_bnhw: (B, N, H, W) softmax probs; target_b1hw: (B, 1, H, W) int labels."""
    B, N = int(pred_bnhw.shape[0]), int(pred_bnhw.shape[1])
    S = int(np.prod(pred_bnhw.shape[2:]))

    # --- spatial tiling: sublane dim is spatial, padded to TILE_SUB*128 -----
    sub_total = -(-S // LANES)                                        # cdiv
    max_sub_by_vmem = max(8, (2 * 1024 * 1024) // (N * LANES * 4))    # pred tile <= ~2 MiB
    tile_sub = max(8, min(512, (max_sub_by_vmem // 8) * 8))
    if sub_total <= tile_sub:                                         # single tile: shrink
        tile_sub = max(8, -(-sub_total // 8) * 8)
    sub_pad = -(-sub_total // tile_sub) * tile_sub
    num_tiles = sub_pad // tile_sub
    S_pad = sub_pad * LANES

    pred = pred_bnhw.reshape(B, N, S).astype(jnp.float32)
    tgt = target_b1hw.reshape(B, S).astype(jnp.int32)
    if S_pad != S:
        # pred padded with 0 (keeps dice denominators exact); target padded with
        # -1 so padded positions one-hot to nothing (CE and dice contribute 0).
        pred = jnp.pad(pred, ((0, 0), (0, 0), (0, S_pad - S)))
        tgt = jnp.pad(tgt, ((0, 0), (0, S_pad - S)), constant_values=-1)
    pred = pred.reshape(B, N, sub_pad, LANES)
    tgt = tgt.reshape(B, sub_pad, LANES)

    # --- explicit VMEM budget: double-buffered inputs + 2 accumulators ------
    pred_tile_bytes = N * tile_sub * LANES * 4
    tgt_tile_bytes = tile_sub * LANES * 4
    est = 4 * pred_tile_bytes + 2 * tgt_tile_bytes + (1 << 20)
    vmem_limit = int(min(48 * 1024 * 1024, max(16 * 1024 * 1024, est + est // 2)))

    kernel = _make_kernel(N, tile_sub, ignore_index)
    ce_part, inter_part, g_part, p_part = pl.pallas_call(
        kernel,
        out_shape=(
            jax.ShapeDtypeStruct((num_tiles, 1, LANES), jnp.float32),
            jax.ShapeDtypeStruct((num_tiles, B, N, LANES), jnp.float32),
            jax.ShapeDtypeStruct((num_tiles, B, N, LANES), jnp.float32),
            jax.ShapeDtypeStruct((num_tiles, B, N, LANES), jnp.float32),
        ),
        grid_spec=pltpu.PrefetchScalarGridSpec(
            num_scalar_prefetch=0,
            grid=(num_tiles, B),                     # B last => inner reduction axis
            in_specs=[
                pl.BlockSpec((1, N, tile_sub, LANES), lambda t, b: (b, 0, t, 0)),
                pl.BlockSpec((1, tile_sub, LANES), lambda t, b: (b, t, 0)),
            ],
            out_specs=(
                pl.BlockSpec((1, 1, LANES), lambda t, b: (t, 0, 0)),
                pl.BlockSpec((1, 1, N, LANES), lambda t, b: (t, b, 0, 0)),
                pl.BlockSpec((1, 1, N, LANES), lambda t, b: (t, b, 0, 0)),
                pl.BlockSpec((1, 1, N, LANES), lambda t, b: (t, b, 0, 0)),
            ),
            scratch_shapes=[
                pltpu.VMEM((N, tile_sub, LANES), jnp.float32),   # onehot-count acc
                pltpu.VMEM((N, tile_sub, LANES), jnp.float32),   # sum-log acc
            ],
        ),
        compiler_params=pltpu.CompilerParams(
            dimension_semantics=("parallel", "arbitrary"),
            vmem_limit_bytes=vmem_limit,
        ),
    )(pred, tgt)

    # ---- tiny final combine in the surrounding JAX graph --------------------
    # n_batch bookkeeping exactly as the torch module (decremented once per
    # outer batch iteration when class_index == ignore_index; B - B = 0 then,
    # reproducing the reference's divide-by-zero).
    n_batch = B - (B if 0 <= ignore_index < N else 0)
    ce_raw = -jnp.sum(ce_part)
    celoss = ce_raw / n_batch / (B * S)            # mean over the (B,1,H,W) loss map

    inter = jnp.sum(inter_part, axis=(0, 3))       # (B, N) full-spatial sums
    g = jnp.sum(g_part, axis=(0, 3))
    p = jnp.sum(p_part, axis=(0, 3))
    dice = 1.0 - (2.0 * inter + SMOOTH_NR) / (g + p + SMOOTH_DR)
    diceloss = jnp.mean(dice)                      # mean over (B, N)

    return weight_ce * celoss + weight_dice * diceloss


def ref_dicece_soft(pred, target, weight_ce=1.0, weight_dice=1.0,
                    ignore_index=-100):
    """Pure-JAX reference mirroring the PyTorch module line-by-line."""
    B, N = pred.shape[0], pred.shape[1]
    eps = 1e-10
    # AsDiscrete(to_onehot=N)(target.unsqueeze(0)) -> (N, B, 1, H, W)
    x_oh = (target[None, ...] ==
            jnp.arange(N, dtype=target.dtype).reshape(N, 1, 1, 1, 1)
            ).astype(jnp.float32)
    loss = jnp.zeros(target.shape, jnp.float32)
    n_batch = B
    for b_out in range(B):
        for c in range(N):
            if c == ignore_index:
                n_batch -= 1
                continue
            loss = loss - x_oh[c] * jnp.log(pred[b_out, c] + eps)
    celoss = jnp.mean(loss / n_batch)
    # MONAI DiceLoss(softmax=False, to_onehot_y=True), defaults
    t_oh = (target == jnp.arange(N, dtype=target.dtype).reshape(1, N, 1, 1)
            ).astype(jnp.float32)                                  # (B, N, H, W)
    inter = jnp.sum(t_oh * pred, axis=(2, 3))
    g = jnp.sum(t_oh, axis=(2, 3))
    p = jnp.sum(pred, axis=(2, 3))
    dice = jnp.mean(1.0 - (2.0 * inter + SMOOTH_NR) / (g + p + SMOOTH_DR))
    return weight_ce * celoss + weight_dice * dice


if __name__ == "__main__":
    key = jax.random.PRNGKey(0)
    k1, k2 = jax.random.split(key)
    B, N, H, W = 2, 4, 16, 16
    logits = jax.random.normal(k1, (B, N, H, W), jnp.float32)
    pred = jax.nn.softmax(logits, axis=1)      # module expects softmax preds, not logits
    target = jax.random.randint(k2, (B, 1, H, W), 0, N, jnp.int32)

    loss = dicece_soft_loss(pred, target, weight_ce=1.0, weight_dice=1.0)
    loss = jax.block_until_ready(loss)

    ref = ref_dicece_soft(pred, target, weight_ce=1.0, weight_dice=1.0)
    np.testing.assert_allclose(np.asarray(loss), np.asarray(ref),
                               rtol=1e-5, atol=1e-5)
    print("KERNEL_OK")
</pallas_src>

<mosaic_0001>
module attributes {stable_mosaic.version = 11 : i64} {
  func.func @kernel(%arg0: i32, %arg1: i32, %arg2: memref<1x4x8x128xf32, #tpu.memory_space<vmem>>, %arg3: memref<1x8x128xi32, #tpu.memory_space<vmem>>, %arg4: memref<1x1x128xf32, #tpu.memory_space<vmem>>, %arg5: memref<1x1x4x128xf32, #tpu.memory_space<vmem>>, %arg6: memref<1x1x4x128xf32, #tpu.memory_space<vmem>>, %arg7: memref<1x1x4x128xf32, #tpu.memory_space<vmem>>, %arg8: memref<4x8x128xf32, #tpu.memory_space<vmem>>, %arg9: memref<4x8x128xf32, #tpu.memory_space<vmem>>) attributes {dimension_semantics = [#tpu.dimension_semantics<parallel>, #tpu.dimension_semantics<arbitrary>], iteration_bounds = array<i64: 1, 2>, scalar_prefetch = 0 : i64, scratch_operands = 2 : i64, tpu.core_type = #tpu.core_type<tc>, window_params = [{transform_indices = @transform_0, window_bounds = array<i64: 1, 4, 8, 128>}, {transform_indices = @transform_1, window_bounds = array<i64: 1, 8, 128>}, {transform_indices = @transform_2, window_bounds = array<i64: 1, 1, 128>}, {transform_indices = @transform_3, window_bounds = array<i64: 1, 1, 4, 128>}, {transform_indices = @transform_4, window_bounds = array<i64: 1, 1, 4, 128>}, {transform_indices = @transform_5, window_bounds = array<i64: 1, 1, 4, 128>}]} {
    %c0_i32 = arith.constant 0 : i32
    %0 = arith.cmpi eq, %arg1, %c0_i32 : i32
    %1 = arith.extui %0 : i1 to i32
    %c0_i32_0 = arith.constant 0 : i32
    %2 = arith.cmpi ne, %1, %c0_i32_0 : i32
    scf.if %2 {
      %cst_94 = arith.constant 0.000000e+00 : f32
      %129 = vector.broadcast %cst_94 : f32 to vector<4x8x128xf32>
      %c0_95 = arith.constant 0 : index
      %c0_96 = arith.constant 0 : index
      %c0_97 = arith.constant 0 : index
      %130 = vector.load %arg8[%c0_95, %c0_96, %c0_97] : memref<4x8x128xf32, #tpu.memory_space<vmem>>, vector<4x8x128xf32>
      tpu.vector_store %arg8[%c0_95, %c0_96, %c0_97], %129 {strides = array<i32>} : memref<4x8x128xf32, #tpu.memory_space<vmem>>, vector<4x8x128xf32>,
      %cst_98 = arith.constant 0.000000e+00 : f32
      %131 = vector.broadcast %cst_98 : f32 to vector<4x8x128xf32>
      %c0_99 = arith.constant 0 : index
      %c0_100 = arith.constant 0 : index
      %c0_101 = arith.constant 0 : index
      %132 = vector.load %arg9[%c0_99, %c0_100, %c0_101] : memref<4x8x128xf32, #tpu.memory_space<vmem>>, vector<4x8x128xf32>
      tpu.vector_store %arg9[%c0_99, %c0_100, %c0_101], %131 {strides = array<i32>} : memref<4x8x128xf32, #tpu.memory_space<vmem>>, vector<4x8x128xf32>,
    } else {
    }
    %c0 = arith.constant 0 : index
    %c0_1 = arith.constant 0 : index
    %c0_2 = arith.constant 0 : index
    %3 = vector.load %arg3[%c0, %c0_1, %c0_2] : memref<1x8x128xi32, #tpu.memory_space<vmem>>, vector<1x8x128xi32>
    %4 = vector.shape_cast %3 : vector<1x8x128xi32> to vector<8x128xi32>
    %c0_3 = arith.constant 0 : index
    %c0_4 = arith.constant 0 : index
    %c0_5 = arith.constant 0 : index
    %c0_6 = arith.constant 0 : index
    %5 = vector.load %arg2[%c0_3, %c0_4, %c0_5, %c0_6] : memref<1x4x8x128xf32, #tpu.memory_space<vmem>>, vector<1x1x8x128xf32>
    %6 = vector.shape_cast %5 : vector<1x1x8x128xf32> to vector<8x128xf32>
    %c0_i32_7 = arith.constant 0 : i32
    %7 = vector.broadcast %c0_i32_7 : i32 to vector<8x128xi32>
    %8 = arith.cmpi eq, %4, %7 : vector<8x128xi32>
    %9 = arith.extui %8 : vector<8x128xi1> to vector<8x128xi32>
    %10 = arith.sitofp %9 : vector<8x128xi32> to vector<8x128xf32>
    %c0_8 = arith.constant 0 : index
    %c0_9 = arith.constant 0 : index
    %c0_10 = arith.constant 0 : index
    %11 = vector.load %arg8[%c0_8, %c0_9, %c0_10] : memref<4x8x128xf32, #tpu.memory_space<vmem>>, vector<1x8x128xf32>
    %12 = vector.shape_cast %11 : vector<1x8x128xf32> to vector<8x128xf32>
    %13 = arith.addf %12, %10 : vector<8x128xf32>
    %c0_11 = arith.constant 0 : index
    %c0_12 = arith.constant 0 : index
    %c0_13 = arith.constant 0 : index
    %14 = vector.load %arg8[%c0_11, %c0_12, %c0_13] : memref<4x8x128xf32, #tpu.memory_space<vmem>>, vector<1x8x128xf32>
    %15 = vector.shape_cast %14 : vector<1x8x128xf32> to vector<8x128xf32>
    %16 = vector.shape_cast %13 : vector<8x128xf32> to vector<1x8x128xf32>
    tpu.vector_store %arg8[%c0_11, %c0_12, %c0_13], %16 {strides = array<i32>} : memref<4x8x128xf32, #tpu.memory_space<vmem>>, vector<1x8x128xf32>,
    %c0_14 = arith.constant 0 : index
    %c0_15 = arith.constant 0 : index
    %c0_16 = arith.constant 0 : index
    %17 = vector.load %arg9[%c0_14, %c0_15, %c0_16] : memref<4x8x128xf32, #tpu.memory_space<vmem>>, vector<1x8x128xf32>
    %18 = vector.shape_cast %17 : vector<1x8x128xf32> to vector<8x128xf32>
    %cst = arith.constant 1.000000e-10 : f32
    %19 = vector.broadcast %cst : f32 to vector<8x128xf32>
    %20 = arith.addf %6, %19 : vector<8x128xf32>
    %21 = math.log %20 : vector<8x128xf32>
    %22 = arith.addf %18, %21 : vector<8x128xf32>
    %c0_17 = arith.constant 0 : index
    %c0_18 = arith.constant 0 : index
    %c0_19 = arith.constant 0 : index
    %23 = vector.load %arg9[%c0_17, %c0_18, %c0_19] : memref<4x8x128xf32, #tpu.memory_space<vmem>>, vector<1x8x128xf32>
    %24 = vector.shape_cast %23 : vector<1x8x128xf32> to vector<8x128xf32>
    %25 = vector.shape_cast %22 : vector<8x128xf32> to vector<1x8x128xf32>
    tpu.vector_store %arg9[%c0_17, %c0_18, %c0_19], %25 {strides = array<i32>} : memref<4x8x128xf32, #tpu.memory_space<vmem>>, vector<1x8x128xf32>,
    %26 = arith.mulf %10, %6 : vector<8x128xf32>
    %cst_20 = arith.constant dense<0.000000e+00> : vector<128xf32>
    %27 = vector.multi_reduction <add>, %26, %cst_20 [0] : vector<8x128xf32> to vector<128xf32>
    %28 = vector.shape_cast %27 : vector<128xf32> to vector<1x128xf32>
    %cst_21 = arith.constant dense<0.000000e+00> : vector<128xf32>
    %29 = vector.multi_reduction <add>, %10, %cst_21 [0] : vector<8x128xf32> to vector<128xf32>
    %30 = vector.shape_cast %29 : vector<128xf32> to vector<1x128xf32>
    %cst_22 = arith.constant dense<0.000000e+00> : vector<128xf32>
    %31 = vector.multi_reduction <add>, %6, %cst_22 [0] : vector<8x128xf32> to vector<128xf32>
    %32 = vector.shape_cast %31 : vector<128xf32> to vector<1x128xf32>
    %c0_23 = arith.constant 0 : index
    %c1 = arith.constant 1 : index
    %c0_24 = arith.constant 0 : index
    %c0_25 = arith.constant 0 : index
    %33 = vector.load %arg2[%c0_23, %c1, %c0_24, %c0_25] : memref<1x4x8x128xf32, #tpu.memory_space<vmem>>, vector<1x1x8x128xf32>
    %34 = vector.shape_cast %33 : vector<1x1x8x128xf32> to vector<8x128xf32>
    %c1_i32 = arith.constant 1 : i32
    %35 = vector.broadcast %c1_i32 : i32 to vector<8x128xi32>
    %36 = arith.cmpi eq, %4, %35 : vector<8x128xi32>
    %37 = arith.extui %36 : vector<8x128xi1> to vector<8x128xi32>
    %38 = arith.sitofp %37 : vector<8x128xi32> to vector<8x128xf32>
    %c1_26 = arith.constant 1 : index
    %c0_27 = arith.constant 0 : index
    %c0_28 = arith.constant 0 : index
    %39 = vector.load %arg8[%c1_26, %c0_27, %c0_28] : memref<4x8x128xf32, #tpu.memory_space<vmem>>, vector<1x8x128xf32>
    %40 = vector.shape_cast %39 : vector<1x8x128xf32> to vector<8x128xf32>
    %41 = arith.addf %40, %38 : vector<8x128xf32>
    %c1_29 = arith.constant 1 : index
    %c0_30 = arith.constant 0 : index
    %c0_31 = arith.constant 0 : index
    %42 = vector.load %arg8[%c1_29, %c0_30, %c0_31] : memref<4x8x128xf32, #tpu.memory_space<vmem>>, vector<1x8x128xf32>
    %43 = vector.shape_cast %42 : vector<1x8x128xf32> to vector<8x128xf32>
    %44 = vector.shape_cast %41 : vector<8x128xf32> to vector<1x8x128xf32>
    tpu.vector_store %arg8[%c1_29, %c0_30, %c0_31], %44 {strides = array<i32>} : memref<4x8x128xf32, #tpu.memory_space<vmem>>, vector<1x8x128xf32>,
    %c1_32 = arith.constant 1 : index
    %c0_33 = arith.constant 0 : index
    %c0_34 = arith.constant 0 : index
    %45 = vector.load %arg9[%c1_32, %c0_33, %c0_34] : memref<4x8x128xf32, #tpu.memory_space<vmem>>, vector<1x8x128xf32>
    %46 = vector.shape_cast %45 : vector<1x8x128xf32> to vector<8x128xf32>
    %cst_35 = arith.constant 1.000000e-10 : f32
    %47 = vector.broadcast %cst_35 : f32 to vector<8x128xf32>
    %48 = arith.addf %34, %47 : vector<8x128xf32>
    %49 = math.log %48 : vector<8x128xf32>
    %50 = arith.addf %46, %49 : vector<8x128xf32>
    %c1_36 = arith.constant 1 : index
    %c0_37 = arith.constant 0 : index
    %c0_38 = arith.constant 0 : index
    %51 = vector.load %arg9[%c1_36, %c0_37, %c0_38] : memref<4x8x128xf32, #tpu.memory_space<vmem>>, vector<1x8x128xf32>
    %52 = vector.shape_cast %51 : vector<1x8x128xf32> to vector<8x128xf32>
    %53 = vector.shape_cast %50 : vector<8x128xf32> to vector<1x8x128xf32>
    tpu.vector_store %arg9[%c1_36, %c0_37, %c0_38], %53 {strides = array<i32>} : memref<4x8x128xf32, #tpu.memory_space<vmem>>, vector<1x8x128xf32>,
    %54 = arith.mulf %38, %34 : vector<8x128xf32>
    %cst_39 = arith.constant dense<0.000000e+00> : vector<128xf32>
    %55 = vector.multi_reduction <add>, %54, %cst_39 [0] : vector<8x128xf32> to vector<128xf32>
    %56 = vector.shape_cast %55 : vector<128xf32> to vector<1x128xf32>
    %cst_40 = arith.constant dense<0.000000e+00> : vector<128xf32>
    %57 = vector.multi_reduction <add>, %38, %cst_40 [0] : vector<8x128xf32> to vector<128xf32>
    %58 = vector.shape_cast %57 : vector<128xf32> to vector<1x128xf32>
    %cst_41 = arith.constant dense<0.000000e+00> : vector<128xf32>
    %59 = vector.multi_reduction <add>, %34, %cst_41 [0] : vector<8x128xf32> to vector<128xf32>
    %60 = vector.shape_cast %59 : vector<128xf32> to vector<1x128xf32>
    %c0_42 = arith.constant 0 : index
    %c2 = arith.constant 2 : index
    %c0_43 = arith.constant 0 : index
    %c0_44 = arith.constant 0 : index
    %61 = vector.load %arg2[%c0_42, %c2, %c0_43, %c0_44] : memref<1x4x8x128xf32, #tpu.memory_space<vmem>>, vector<1x1x8x128xf32>
    %62 = vector.shape_cast %61 : vector<1x1x8x128xf32> to vector<8x128xf32>
    %c2_i32 = arith.constant 2 : i32
    %63 = vector.broadcast %c2_i32 : i32 to vector<8x128xi32>
    %64 = arith.cmpi eq, %4, %63 : vector<8x128xi32>
    %65 = arith.extui %64 : vector<8x128xi1> to vector<8x128xi32>
    %66 = arith.sitofp %65 : vector<8x128xi32> to vector<8x128xf32>
    %c2_45 = arith.constant 2 : index
    %c0_46 = arith.constant 0 : index
    %c0_47 = arith.constant 0 : index
    %67 = vector.load %arg8[%c2_45, %c0_46, %c0_47] : memref<4x8x128xf32, #tpu.memory_space<vmem>>, vector<1x8x128xf32>
    %68 = vector.shape_cast %67 : vector<1x8x128xf32> to vector<8x128xf32>
    %69 = arith.addf %68, %66 : vector<8x128xf32>
    %c2_48 = arith.constant 2 : index
    %c0_49 = arith.constant 0 : index
    %c0_50 = arith.constant 0 : index
    %70 = vector.load %arg8[%c2_48, %c0_49, %c0_50] : memref<4x8x128xf32, #tpu.memory_space<vmem>>, vector<1x8x128xf32>
    %71 = vector.shape_cast %70 : vector<1x8x128xf32> to vector<8x128xf32>
    %72 = vector.shape_cast %69 : vector<8x128xf32> to vector<1x8x128xf32>
    tpu.vector_store %arg8[%c2_48, %c0_49, %c0_50], %72 {strides = array<i32>} : memref<4x8x128xf32, #tpu.memory_space<vmem>>, vector<1x8x128xf32>,
    %c2_51 = arith.constant 2 : index
    %c0_52 = arith.constant 0 : index
    %c0_53 = arith.constant 0 : index
    %73 = vector.load %arg9[%c2_51, %c0_52, %c0_53] : memref<4x8x128xf32, #tpu.memory_space<vmem>>, vector<1x8x128xf32>
    %74 = vector.shape_cast %73 : vector<1x8x128xf32> to vector<8x128xf32>
    %cst_54 = arith.constant 1.000000e-10 : f32
    %75 = vector.broadcast %cst_54 : f32 to vector<8x128xf32>
    %76 = arith.addf %62, %75 : vector<8x128xf32>
    %77 = math.log %76 : vector<8x128xf32>
    %78 = arith.addf %74, %77 : vector<8x128xf32>
    %c2_55 = arith.constant 2 : index
    %c0_56 = arith.constant 0 : index
    %c0_57 = arith.constant 0 : index
    %79 = vector.load %arg9[%c2_55, %c0_56, %c0_57] : memref<4x8x128xf32, #tpu.memory_space<vmem>>, vector<1x8x128xf32>
    %80 = vector.shape_cast %79 : vector<1x8x128xf32> to vector<8x128xf32>
    %81 = vector.shape_cast %78 : vector<8x128xf32> to vector<1x8x128xf32>
    tpu.vector_store %arg9[%c2_55, %c0_56, %c0_57], %81 {strides = array<i32>} : memref<4x8x128xf32, #tpu.memory_space<vmem>>, vector<1x8x128xf32>,
    %82 = arith.mulf %66, %62 : vector<8x128xf32>
    %cst_58 = arith.constant dense<0.000000e+00> : vector<128xf32>
    %83 = vector.multi_reduction <add>, %82, %cst_58 [0] : vector<8x128xf32> to vector<128xf32>
    %84 = vector.shape_cast %83 : vector<128xf32> to vector<1x128xf32>
    %cst_59 = arith.constant dense<0.000000e+00> : vector<128xf32>
    %85 = vector.multi_reduction <add>, %66, %cst_59 [0] : vector<8x128xf32> to vector<128xf32>
    %86 = vector.shape_cast %85 : vector<128xf32> to vector<1x128xf32>
    %cst_60 = arith.constant dense<0.000000e+00> : vector<128xf32>
    %87 = vector.multi_reduction <add>, %62, %cst_60 [0] : vector<8x128xf32> to vector<128xf32>
    %88 = vector.shape_cast %87 : vector<128xf32> to vector<1x128xf32>
    %c0_61 = arith.constant 0 : index
    %c3 = arith.constant 3 : index
    %c0_62 = arith.constant 0 : index
    %c0_63 = arith.constant 0 : index
    %89 = vector.load %arg2[%c0_61, %c3, %c0_62, %c0_63] : memref<1x4x8x128xf32, #tpu.memory_space<vmem>>, vector<1x1x8x128xf32>
    %90 = vector.shape_cast %89 : vector<1x1x8x128xf32> to vector<8x128xf32>
    %c3_i32 = arith.constant 3 : i32
    %91 = vector.broadcast %c3_i32 : i32 to vector<8x128xi32>
    %92 = arith.cmpi eq, %4, %91 : vector<8x128xi32>
    %93 = arith.extui %92 : vector<8x128xi1> to vector<8x128xi32>
    %94 = arith.sitofp %93 : vector<8x128xi32> to vector<8x128xf32>
    %c3_64 = arith.constant 3 : index
    %c0_65 = arith.constant 0 : index
    %c0_66 = arith.constant 0 : index
    %95 = vector.load %arg8[%c3_64, %c0_65, %c0_66] : memref<4x8x128xf32, #tpu.memory_space<vmem>>, vector<1x8x128xf32>
    %96 = vector.shape_cast %95 : vector<1x8x128xf32> to vector<8x128xf32>
    %97 = arith.addf %96, %94 : vector<8x128xf32>
    %c3_67 = arith.constant 3 : index
    %c0_68 = arith.constant 0 : index
    %c0_69 = arith.constant 0 : index
    %98 = vector.load %arg8[%c3_67, %c0_68, %c0_69] : memref<4x8x128xf32, #tpu.memory_space<vmem>>, vector<1x8x128xf32>
    %99 = vector.shape_cast %98 : vector<1x8x128xf32> to vector<8x128xf32>
    %100 = vector.shape_cast %97 : vector<8x128xf32> to vector<1x8x128xf32>
    tpu.vector_store %arg8[%c3_67, %c0_68, %c0_69], %100 {strides = array<i32>} : memref<4x8x128xf32, #tpu.memory_space<vmem>>, vector<1x8x128xf32>,
    %c3_70 = arith.constant 3 : index
    %c0_71 = arith.constant 0 : index
    %c0_72 = arith.constant 0 : index
    %101 = vector.load %arg9[%c3_70, %c0_71, %c0_72] : memref<4x8x128xf32, #tpu.memory_space<vmem>>, vector<1x8x128xf32>
    %102 = vector.shape_cast %101 : vector<1x8x128xf32> to vector<8x128xf32>
    %cst_73 = arith.constant 1.000000e-10 : f32
    %103 = vector.broadcast %cst_73 : f32 to vector<8x128xf32>
    %104 = arith.addf %90, %103 : vector<8x128xf32>
    %105 = math.log %104 : vector<8x128xf32>
    %106 = arith.addf %102, %105 : vector<8x128xf32>
    %c3_74 = arith.constant 3 : index
    %c0_75 = arith.constant 0 : index
    %c0_76 = arith.constant 0 : index
    %107 = vector.load %arg9[%c3_74, %c0_75, %c0_76] : memref<4x8x128xf32, #tpu.memory_space<vmem>>, vector<1x8x128xf32>
    %108 = vector.shape_cast %107 : vector<1x8x128xf32> to vector<8x128xf32>
    %109 = vector.shape_cast %106 : vector<8x128xf32> to vector<1x8x128xf32>
    tpu.vector_store %arg9[%c3_74, %c0_75, %c0_76], %109 {strides = array<i32>} : memref<4x8x128xf32, #tpu.memory_space<vmem>>, vector<1x8x128xf32>,
    %110 = arith.mulf %94, %90 : vector<8x128xf32>
    %cst_77 = arith.constant dense<0.000000e+00> : vector<128xf32>
    %111 = vector.multi_reduction <add>, %110, %cst_77 [0] : vector<8x128xf32> to vector<128xf32>
    %112 = vector.shape_cast %111 : vector<128xf32> to vector<1x128xf32>
    %cst_78 = arith.constant dense<0.000000e+00> : vector<128xf32>
    %113 = vector.multi_reduction <add>, %94, %cst_78 [0] : vector<8x128xf32> to vector<128xf32>
    %114 = vector.shape_cast %113 : vector<128xf32> to vector<1x128xf32>
    %cst_79 = arith.constant dense<0.000000e+00> : vector<128xf32>
    %115 = vector.multi_reduction <add>, %90, %cst_79 [0] : vector<8x128xf32> to vector<128xf32>
    %116 = vector.shape_cast %115 : vector<128xf32> to vector<1x128xf32>
    %117 = tpu.concatenate %28, %56, %84, %112 in 0 : vector<1x128xf32>, vector<1x128xf32>, vector<1x128xf32>, vector<1x128xf32> -> vector<4x128xf32>
    %118 = vector.shape_cast %117 : vector<4x128xf32> to vector<1x1x4x128xf32>
    %c0_80 = arith.constant 0 : index
    %c0_81 = arith.constant 0 : index
    %c0_82 = arith.constant 0 : index
    %c0_83 = arith.constant 0 : index
    %119 = vector.load %arg5[%c0_80, %c0_81, %c0_82, %c0_83] : memref<1x1x4x128xf32, #tpu.memory_space<vmem>>, vector<1x1x4x128xf32>
    tpu.vector_store %arg5[%c0_80, %c0_81, %c0_82, %c0_83], %118 {strides = array<i32>} : memref<1x1x4x128xf32, #tpu.memory_space<vmem>>, vector<1x1x4x128xf32>,
    %120 = tpu.concatenate %30, %58, %86, %114 in 0 : vector<1x128xf32>, vector<1x128xf32>, vector<1x128xf32>, vector<1x128xf32> -> vector<4x128xf32>
    %121 = vector.shape_cast %120 : vector<4x128xf32> to vector<1x1x4x128xf32>
    %c0_84 = arith.constant 0 : index
    %c0_85 = arith.constant 0 : index
    %c0_86 = arith.constant 0 : index
    %c0_87 = arith.constant 0 : index
    %122 = vector.load %arg6[%c0_84, %c0_85, %c0_86, %c0_87] : memref<1x1x4x128xf32, #tpu.memory_space<vmem>>, vector<1x1x4x128xf32>
    tpu.vector_store %arg6[%c0_84, %c0_85, %c0_86, %c0_87], %121 {strides = array<i32>} : memref<1x1x4x128xf32, #tpu.memory_space<vmem>>, vector<1x1x4x128xf32>,
    %123 = tpu.concatenate %32, %60, %88, %116 in 0 : vector<1x128xf32>, vector<1x128xf32>, vector<1x128xf32>, vector<1x128xf32> -> vector<4x128xf32>
    %124 = vector.shape_cast %123 : vector<4x128xf32> to vector<1x1x4x128xf32>
    %c0_88 = arith.constant 0 : index
    %c0_89 = arith.constant 0 : index
    %c0_90 = arith.constant 0 : index
    %c0_91 = arith.constant 0 : index
    %125 = vector.load %arg7[%c0_88, %c0_89, %c0_90, %c0_91] : memref<1x1x4x128xf32, #tpu.memory_space<vmem>>, vector<1x1x4x128xf32>
    tpu.vector_store %arg7[%c0_88, %c0_89, %c0_90, %c0_91], %124 {strides = array<i32>} : memref<1x1x4x128xf32, #tpu.memory_space<vmem>>, vector<1x1x4x128xf32>,
    %c1_i32_92 = arith.constant 1 : i32
    %126 = arith.cmpi eq, %arg1, %c1_i32_92 : i32
    %127 = arith.extui %126 : i1 to i32
    %c0_i32_93 = arith.constant 0 : i32
    %128 = arith.cmpi ne, %127, %c0_i32_93 : i32
    scf.if %128 {
      %c0_94 = arith.constant 0 : index
      %c0_95 = arith.constant 0 : index
      %c0_96 = arith.constant 0 : index
      %129 = vector.load %arg8[%c0_94, %c0_95, %c0_96] : memref<4x8x128xf32, #tpu.memory_space<vmem>>, vector<1x8x128xf32>
      %130 = vector.shape_cast %129 : vector<1x8x128xf32> to vector<8x128xf32>
      %c0_97 = arith.constant 0 : index
      %c0_98 = arith.constant 0 : index
      %c0_99 = arith.constant 0 : index
      %131 = vector.load %arg9[%c0_97, %c0_98, %c0_99] : memref<4x8x128xf32, #tpu.memory_space<vmem>>, vector<1x8x128xf32>
      %132 = vector.shape_cast %131 : vector<1x8x128xf32> to vector<8x128xf32>
      %133 = arith.mulf %130, %132 : vector<8x128xf32>
      %c1_100 = arith.constant 1 : index
      %c0_101 = arith.constant 0 : index
      %c0_102 = arith.constant 0 : index
      %134 = vector.load %arg8[%c1_100, %c0_101, %c0_102] : memref<4x8x128xf32, #tpu.memory_space<vmem>>, vector<1x8x128xf32>
      %135 = vector.shape_cast %134 : vector<1x8x128xf32> to vector<8x128xf32>
      %c1_103 = arith.constant 1 : index
      %c0_104 = arith.constant 0 : index
      %c0_105 = arith.constant 0 : index
      %136 = vector.load %arg9[%c1_103, %c0_104, %c0_105] : memref<4x8x128xf32, #tpu.memory_space<vmem>>, vector<1x8x128xf32>
      %137 = vector.shape_cast %136 : vector<1x8x128xf32> to vector<8x128xf32>
      %138 = arith.mulf %135, %137 : vector<8x128xf32>
      %139 = arith.addf %133, %138 : vector<8x128xf32>
      %c2_106 = arith.constant 2 : index
      %c0_107 = arith.constant 0 : index
      %c0_108 = arith.constant 0 : index
      %140 = vector.load %arg8[%c2_106, %c0_107, %c0_108] : memref<4x8x128xf32, #tpu.memory_space<vmem>>, vector<1x8x128xf32>
      %141 = vector.shape_cast %140 : vector<1x8x128xf32> to vector<8x128xf32>
      %c2_109 = arith.constant 2 : index
      %c0_110 = arith.constant 0 : index
      %c0_111 = arith.constant 0 : index
      %142 = vector.load %arg9[%c2_109, %c0_110, %c0_111] : memref<4x8x128xf32, #tpu.memory_space<vmem>>, vector<1x8x128xf32>
      %143 = vector.shape_cast %142 : vector<1x8x128xf32> to vector<8x128xf32>
      %144 = arith.mulf %141, %143 : vector<8x128xf32>
      %145 = arith.addf %139, %144 : vector<8x128xf32>
      %c3_112 = arith.constant 3 : index
      %c0_113 = arith.constant 0 : index
      %c0_114 = arith.constant 0 : index
      %146 = vector.load %arg8[%c3_112, %c0_113, %c0_114] : memref<4x8x128xf32, #tpu.memory_space<vmem>>, vector<1x8x128xf32>
      %147 = vector.shape_cast %146 : vector<1x8x128xf32> to vector<8x128xf32>
      %c3_115 = arith.constant 3 : index
      %c0_116 = arith.constant 0 : index
      %c0_117 = arith.constant 0 : index
      %148 = vector.load %arg9[%c3_115, %c0_116, %c0_117] : memref<4x8x128xf32, #tpu.memory_space<vmem>>, vector<1x8x128xf32>
      %149 = vector.shape_cast %148 : vector<1x8x128xf32> to vector<8x128xf32>
      %150 = arith.mulf %147, %149 : vector<8x128xf32>
      %151 = arith.addf %145, %150 : vector<8x128xf32>
      %cst_118 = arith.constant dense<0.000000e+00> : vector<128xf32>
      %152 = vector.multi_reduction <add>, %151, %cst_118 [0] : vector<8x128xf32> to vector<128xf32>
      %153 = vector.shape_cast %152 : vector<128xf32> to vector<1x128xf32>
      %154 = vector.shape_cast %153 : vector<1x128xf32> to vector<1x1x128xf32>
      %c0_119 = arith.constant 0 : index
      %c0_120 = arith.constant 0 : index
      %c0_121 = arith.constant 0 : index
      %155 = vector.load %arg4[%c0_119, %c0_120, %c0_121] : memref<1x1x128xf32, #tpu.memory_space<vmem>>, vector<1x1x128xf32>
      tpu.vector_store %arg4[%c0_119, %c0_120, %c0_121], %154 {strides = array<i32>} : memref<1x1x128xf32, #tpu.memory_space<vmem>>, vector<1x1x128xf32>,
    } else {
    }
    return
  }
  func.func @transform_0(%arg0: i32, %arg1: i32) -> (i32, i32, i32, i32) {
    %c0_i32 = arith.constant 0 : i32
    %c0_i32_0 = arith.constant 0 : i32
    %c0_i32_1 = arith.constant 0 : i32
    return %arg1, %c0_i32, %arg0, %c0_i32_0 : i32, i32, i32, i32
  }
  func.func @transform_1(%arg0: i32, %arg1: i32) -> (i32, i32, i32) {
    %c0_i32 = arith.constant 0 : i32
    %c0_i32_0 = arith.constant 0 : i32
    return %arg1, %arg0, %c0_i32 : i32, i32, i32
  }
  func.func @transform_2(%arg0: i32, %arg1: i32) -> (i32, i32, i32) {
    %c0_i32 = arith.constant 0 : i32
    %c0_i32_0 = arith.constant 0 : i32
    %c0_i32_1 = arith.constant 0 : i32
    return %arg0, %c0_i32, %c0_i32_0 : i32, i32, i32
  }
  func.func @transform_3(%arg0: i32, %arg1: i32) -> (i32, i32, i32, i32) {
    %c0_i32 = arith.constant 0 : i32
    %c0_i32_0 = arith.constant 0 : i32
    %c0_i32_1 = arith.constant 0 : i32
    return %arg0, %arg1, %c0_i32, %c0_i32_0 : i32, i32, i32, i32
  }
  func.func @transform_4(%arg0: i32, %arg1: i32) -> (i32, i32, i32, i32) {
    %c0_i32 = arith.constant 0 : i32
    %c0_i32_0 = arith.constant 0 : i32
    %c0_i32_1 = arith.constant 0 : i32
    return %arg0, %arg1, %c0_i32, %c0_i32_0 : i32, i32, i32, i32
  }
  func.func @transform_5(%arg0: i32, %arg1: i32) -> (i32, i32, i32, i32) {
    %c0_i32 = arith.constant 0 : i32
    %c0_i32_0 = arith.constant 0 : i32
    %c0_i32_1 = arith.constant 0 : i32
    return %arg0, %arg1, %c0_i32, %c0_i32_0 : i32, i32, i32, i32
  }
}

</mosaic_0001>

<bundles_post_ra>
// kernel: tpu_custom_call.1
= control target key start
LH: loop header
LB: loop body
LE: loop exit
PB: predicated region body
PF: predicated region fallthrough
CT: control target
= control target key end

     0   :  { %s1534_s0 = inlined_call_operand.hbm [shape: f32[2,4,8,128], index: 0, kind: input, shape index: {}]   ;;  %s1535_s1 = inlined_call_operand.hbm [shape: s32[2,8,128], index: 1, kind: input, shape index: {}]   ;;  %s1536_s2 = inlined_call_operand.hbm [shape: f32[1,1,128], index: 2, kind: output, shape index: {0}]   ;;  %s1537_s3 = inlined_call_operand.hbm [shape: f32[1,2,4,128], index: 3, kind: output, shape index: {1}]   ;;  %s1538_s4 = inlined_call_operand.hbm [shape: f32[1,2,4,128], index: 4, kind: output, shape index: {2}]   ;;  %s1539_s5 = inlined_call_operand.hbm [shape: f32[1,2,4,128], index: 5, kind: output, shape index: {3}]  }
   0x1   :  { %1545 = sst [smem:[#allocation21_spill]] %s1534_s0 }
   0x2   :  { %11 = vsyncpa [#allocation5], 0 }
   0x3   :  { %13 = vsyncpa [#allocation5 + $0x1], 0 }
   0x4   :  { %14 = vsyncpa [#allocation8], 0 }
   0x5   :  { %16 = vsyncpa [#allocation8 + $0x1], 0 }
   0x6   :  { %17 = vsyncpa [#allocation6], 0 }
   0x7   :  { %18 = vsyncpa [#allocation11], 0 }
   0x8   :  { %20 = vsyncpa [#allocation11 + $0x1], 0 }
   0x9   :  { %21 = vsyncpa [#allocation14], 0 }
   0xa   :  { %23 = vsyncpa [#allocation14 + $0x1], 0  ;;  %s1180_s18 = smov 0   ;;  %s1182_s19 = smov 0  }
   0xb   :  { %s1184_s20 = smov 0   ;;  %s1186_s21 = smov 0  }
   0xc   :  { %s1188_s22 = smov 0   ;;  %s1190_s23 = smov 0  }
   0xd LB: > { %s1211_s24 = sadd.s32 4294967295, %s1138_s23   ;;  %s1542_s25 = sadd.s32 4294967294, %s1138_s23   ;;  %s1138_s23 = sphi %s1190_s23, %s29_s23   ;;  %s1134_s22 = sphi %s1188_s22, %s1571_s22   ;;  %s1130_s21 = sphi %s1186_s21, %s1570_s21   ;;  %s1126_s20 = sphi %s1184_s20, %s1569_s20   ;;  %s1122_s19 = sphi %s1182_s19, %s1568_s19   ;;  %s1118_s18 = sphi %s1180_s18, %s1567_s18  }
   0xe   : > { %s38_s26 = sadd.s32 1, %s1134_s22  ;;  %s50_s27 = sadd.s32 1, %s1126_s20 }
   0xf   : > { %p39_p0 = scmp.ge.s32.totalorder %s38_s26, 2  ;;  %p57_p1 = scmp.ne.s32.totalorder %s1126_s20, %s1122_s19 }
  0x10   : > { %p58_p2 = scmp.eq.s32.totalorder %s1138_s23, 0  ;;  %p63_p3 = scmp.ne.s32.totalorder %s1122_s19, %s1118_s18 }
  0x11   : > { %s1573_s26 = smov (%p39_p0, %s38_s26), 0  ;;  %p64_p5 = scmp.eq.s32.totalorder %s1211_s24, 0 }
  0x12   : > { %1546 = sst [smem:[#allocation20_spill]] %s1573_s26  ;;  %p1223_p4 = por %p58_p2, %p57_p1 }
  0x13   : > { %s45_s29 = ssub.s32 %s1134_s22, %s1573_s26  ;;  %p1540_p6 = scmp.eq.s32.totalorder %s1211_s24, 1 }
  0x14   : > { %p48_p7 = scmp.eq.s32.totalorder %s45_s29, 0  ;;  %p1231_p8 = por %p64_p5, %p63_p3 }
  0x15   : > { %p1237_p9 = por %p1540_p6, %p57_p1  ;;  %p149_p10 = scmp.eq.s32.totalorder %s1542_s25, 1 }
  0x16   : > { %s1548_s30 = scalar_select %p1231_p8, 1, 0 }
  0x17   : > { %s1549_s6 = scalar_select %p1237_p9, 1, 0 }
  0x18   : > { %s1244_s7 = scalar_select %p48_p7, %s1126_s20, %s50_s27  }
  0x19   : > { %p1246_p11 = por %p149_p10, %p63_p3  ;;  %p837_p13 = scmp.lt.s32.totalorder %s1138_s23, 2 }
  0x1a   : > { %s1253_s9 = sand.u32 1, %s1126_s20   ;;  %s805_s11 = sshll.u32 %s1134_s22, 9 }
  0x1b   : > { %s1550_s8 = scalar_select %p1246_p11, 1, 0 }
  0x1c   : > { %s775_s10 = sshll.u32 %s1253_s9, 5  ;;  %s1551_s0 = sld [smem:[#allocation21_spill]] }
  0x1d   : > { %s229_s15 = scalar_lea.vmem [#allocation4], %s775_s10  ;;  %p1266_p0 = pnand %p837_p13, %p1223_p4 }
  0x1e   : > { %s237_s16 = sshll.u32 %s229_s15, 4  ;;  %s226_s27 = scalar_lea.sflag [#allocation5], %s1253_s9  ;;  %s1262_s16 = int_to_ptr.vmem [resolvable:$true] %s237_s16 }
  0x1f   : > { %p904_p3 = pneg %p1266_p0 }
  0x22   : > { %s1260_s14 = scalar_lea.hbm %s1551_s0, %s805_s11  ;;  %s907_s28 = scalar_lea.hbm %s1551_s0, 1024 }
  0x23   : > { %s902_s29 = scalar_lea.hbm %s1260_s14, 512  ;;  %p908_p4 = scmp.lt.u32.totalorder %s1260_s14, %s1551_s0 }
  0x24   : > { %p903_p2 = scmp.ne.s32.totalorder %s1260_s14, %s902_s29  ;;  %p909_p10 = scmp.lt.u32.totalorder %s907_s28, %s902_s29 }
  0x25   : > { %p911_p12 = scmp.lt.u32.totalorder %s902_s29, %s1260_s14 }
  0x26   : > { %p905_p5 = pnand %p904_p3, %p903_p2  ;;  %p910_p13 = por %p909_p10, %p908_p4 }
  0x28   : > { %p906_p7 = pneg %p905_p5  ;;  %p912_p6 = por %p911_p12, %p910_p13 }
  0x2a   : > { %p913_p1 = pnand %p912_p6, %p906_p7 }
  0x2c   : > { %916 = shalt.err (!%p913_p1)
}
  0x2d   : > { %s917_s15 = scalar_lea.vmem %s1262_s16, 512  ;;  %s1140_s10 = smov [#allocation4]  }
  0x2e   : > { %p918_p2 = scmp.ne.s32.totalorder %s1262_s16, %s917_s15  ;;  %s922_s11 = sshll.u32 %s1140_s10, 4  ;;  %s923_s11 = int_to_ptr.vmem [resolvable:$false] %s922_s11 }
  0x2f   : > { %s924_s12 = scalar_lea.vmem %s923_s11, 1024  ;;  %p925_p9 = scmp.lt.s32.totalorder %s1262_s16, %s923_s11 }
  0x30   : > { %p920_p5 = pnand %p918_p2, %p904_p3  ;;  %p926_p4 = scmp.lt.s32.totalorder %s924_s12, %s917_s15 }
  0x32   : > { %p921_p11 = pneg %p920_p5  ;;  %p927_p10 = por %p926_p4, %p925_p9 }
  0x34   : > { %p928_p12 = pnand %p927_p10, %p921_p11 }
  0x36   : > { %931 = shalt.err (!%p928_p12)
}
  0x37   : > { %s1141_s29 = smov 128   ;;  %s1142_s28 = smov 8  }
  0x38   : > { %823 = dma.hbm_to_vmem [thread:$0]  (!%p1266_p0), %s1260_s14, 512, %s1262_s16, %s226_s27, %s1141_s29, %s1141_s29, %s1142_s28  }
  0x39   : > { %p264_p6 = scmp.lt.s32.totalorder %s1138_s23, 3  ;;  %s778_s13 = sshll.u32 %s1253_s9, 3 }
  0x3a   : > { %s779_s15 = sshll.u32 %s1134_s22, 7  ;;  %p1553_p9 = scmp.ge.s32.totalorder %s1138_s23, 1 }
  0x3b   : > { %s1311_s25 = scalar_lea.hbm %s1535_s1, %s779_s15  ;;  %s251_s0 = scalar_lea.vmem [#allocation7], %s778_s13 }
  0x3c   : > { %p1304_p11 = pnand %p1553_p9, %p264_p6  ;;  %s259_s26 = sshll.u32 %s251_s0, 4  ;;  %s260_s26 = int_to_ptr.vmem [resolvable:$true] %s259_s26 }
  0x3d   : > { %s248_s14 = scalar_lea.sflag [#allocation8], %s1253_s9  ;;  %s932_s16 = scalar_lea.hbm %s1311_s25, 128 }
  0x3e   : > { %s1554_s10 = scalar_select %p1304_p11, 1, 0 }
  0x3f   : > { %p933_p1 = scmp.ne.s32.totalorder %s1311_s25, %s932_s16  ;;  %s937_s28 = scalar_lea.hbm %s1535_s1, 256 }
  0x40   : > { %p938_p2 = scmp.lt.u32.totalorder %s1311_s25, %s1535_s1  ;;  %p939_p5 = scmp.lt.u32.totalorder %s937_s28, %s932_s16 }
  0x41   : > { %p935_p7 = pnand %p933_p1, %p904_p3  ;;  %p941_p10 = scmp.lt.u32.totalorder %s932_s16, %s1311_s25 }
  0x42   : > { %p940_p4 = por %p939_p5, %p938_p2 }
  0x43   : > { %p936_p13 = pneg %p935_p7 }
  0x44   : > { %p942_p12 = por %p941_p10, %p940_p4 }
  0x46   : > { %p943_p6 = pnand %p942_p12, %p936_p13 }
  0x48   : > { %946 = shalt.err (!%p943_p6)
}
  0x49   : > { %s947_s0 = scalar_lea.vmem %s260_s26, 128  ;;  %s1143_s9 = smov [#allocation7]  }
  0x4a   : > { %p948_p9 = scmp.ne.s32.totalorder %s260_s26, %s947_s0  ;;  %s952_s13 = sshll.u32 %s1143_s9, 4  ;;  %s953_s13 = int_to_ptr.vmem [resolvable:$false] %s952_s13 }
  0x4b   : > { %s954_s12 = scalar_lea.vmem %s953_s13, 256  ;;  %p955_p8 = scmp.lt.s32.totalorder %s260_s26, %s953_s13 }
  0x4c   : > { %p950_p1 = pnand %p948_p9, %p904_p3  ;;  %p956_p11 = scmp.lt.s32.totalorder %s954_s12, %s947_s0 }
  0x4e   : > { %p951_p7 = pneg %p950_p1  ;;  %p957_p2 = por %p956_p11, %p955_p8 }
  0x50   : > { %p958_p5 = pnand %p957_p2, %p951_p7 }
  0x52   : > { %961 = shalt.err (!%p958_p5)
}
  0x53   : > { %826 = dma.hbm_to_vmem [thread:$0]  (!%p1266_p0), %s1311_s25, 128, %s260_s26, %s248_s14  }
  0x54   : > { %p1555_p13 = scmp.ne.s32.totalorder %s1554_s10, 0 }
  0x55   : > { %s1336_s16 = sand.u32 (!%p1555_p13), 1, %s1122_s19   ;;  %p1556_p8 = scmp.ne.s32.totalorder (!%p1555_p13), %s1548_s30, 0 }
  0x56   : > { %268 = sbr.rel (%p1555_p13) target bundleno = 258 (0x102), region = 28  ;;  %s781_s27 = sshll.u32 (!%p1555_p13), %s1336_s16, 5 }
  0x57   : > { %s271_s29 = scalar_lea.sflag (!%p1555_p13), [#allocation5], %s1336_s16  ;;  %s1340_s28 = scalar_lea.vmem (!%p1555_p13), [#allocation4], %s781_s27 }
  0x5d   : > { %1097 = dma.done.wait (%p1556_p8), %s271_s29, 512  }
  0x5e   : > { %1099 = vsyncadd (%p1556_p8), %s271_s29, 4294966784  ;;  %s782_s25 = sshll.u32 %s1336_s16, 3  ;;  %s280_s26 = scalar_lea.sflag [#allocation8], %s1336_s16 }
  0x5f   : > { %s283_s17 = scalar_lea.vmem [#allocation7], %s782_s25 }
  0x60   : > { %1101 = dma.done.wait (%p1556_p8), %s280_s26, 128  }
  0x61   : > { %1103 = vsyncadd (%p1556_p8), %s280_s26, 4294967168  ;;  %s1353_s10 = sshll.u32 %s1336_s16, 2  ;;  %p786_p0 = scmp.ne.s32.totalorder %s1130_s21, 0 }
  0x62   : > { %s310_s14 = scalar_lea.vmem [#allocation10], %s1353_s10  ;;  %s317_s15 = scalar_lea.vmem [#allocation12], %s1353_s10  ;;  %v1144_v0 = vmov (!%p786_p0), 0.0  }
  0x63   : > { %s324_s11 = scalar_lea.vmem [#allocation13], %s1353_s10  ;;  %328 = sbr.rel (%p786_p0) target bundleno = 106 (0x6a), region = 40  ;;  %329 = vst [vmem:[#allocation2] sm:$0xff] (!%p786_p0), %v1144_v0  ;;  %330 = vst [vmem:[#allocation2 + $0x8] sm:$0xff] (!%p786_p0), %v1144_v0 }
  0x64   : > { %331 = vst [vmem:[#allocation2 + $0x10] sm:$0xff] (!%p786_p0), %v1144_v0  ;;  %332 = vst [vmem:[#allocation2 + $0x18] sm:$0xff] (!%p786_p0), %v1144_v0 }
  0x65   : > { %333 = vst [vmem:[#allocation3] sm:$0xff] (!%p786_p0), %v1144_v0  ;;  %334 = vst [vmem:[#allocation3 + $0x8] sm:$0xff] (!%p786_p0), %v1144_v0 }
  0x66   : > { %335 = vst [vmem:[#allocation3 + $0x10] sm:$0xff] (!%p786_p0), %v1144_v0  ;;  %336 = vst [vmem:[#allocation3 + $0x18] sm:$0xff] (!%p786_p0), %v1144_v0 }
  0x6a PF: > { %v337_v1 = vld [vmem:[%s283_s17] sm:$0xff]  ;;  %v1145_v6 = vmov 0.0   ;;  %v1369_v14 = vld [vmem:[%s1340_s28 + $0x10] sm:$0xff]  ;;  %v1374_v25 = vld [vmem:[%s1340_s28 + $0x18] sm:$0xff]  ;;  %vm475_vm4 = vcmask 1040384   ;;  %vm477_vm5 = vcmask 1041408  }
  0x6b   : > { %v1360_v2 = vld [vmem:[%s1340_s28] sm:$0xff]  ;;  %vm339_vm0 = vcmp.eq.s32.totalorder %v337_v1, 0  ;;  %v1364_v5 = vld [vmem:[%s1340_s28 + $0x8] sm:$0xff]  ;;  %vm372_vm1 = vcmp.eq.s32.totalorder %v337_v1, 1  ;;  %v411_v18 = vld [vmem:[#allocation2 + $0x10] sm:$0xff]  ;;  %vm407_vm2 = vcmp.eq.s32.totalorder %v337_v1, 2 }
  0x6c   : > { %v342_v3 = vld [vmem:[#allocation2] sm:$0xff]  ;;  %v346_v4 = vadd.f32 1e-10, %v1360_v2  ;;  %v787_v7 = vsel %vm339_vm0, 1.0, %v1145_v6  ;;  %v789_v8 = vsel %vm372_vm1, 1.0, %v1145_v6  ;;  %v376_v9 = vld [vmem:[#allocation2 + $0x8] sm:$0xff] }
  0x6d   : > { %v381_v10 = vadd.f32 1e-10, %v1364_v5  ;;  %v343_v11 = vadd.f32 %v787_v7, %v342_v3  ;;  %v351_v12 = vmul.f32 %v787_v7, %v1360_v2  ;;  %v358_v13 = vrot.slane %v787_v7, 4  ;;  %v446_v30 = vld [vmem:[#allocation2 + $0x18] sm:$0xff]  ;;  %v345_v49 = vld [vmem:[#allocation3] sm:$0xff]  ;;  %v380_v56 = vld [vmem:[#allocation3 + $0x8] sm:$0xff] }
  0x6e   : > { %894 = vlog2.f32 %v346_v4  ;;  %v377_v15 = vadd.f32 %v789_v8, %v376_v9  ;;  %v386_v16 = vmul.f32 %v789_v8, %v1364_v5  ;;  %v393_v17 = vrot.slane %v789_v8, 4  ;;  %p794_p3 = scmp.ne.s32.totalorder %s1130_s21, 1 }
  0x6f   : > { %896 = vlog2.f32 %v381_v10  ;;  %344 = vst [vmem:[#allocation2] sm:$0xff] %v343_v11  ;;  %v352_v19 = vrot.slane %v351_v12, 4  ;;  %v359_v20 = vadd.f32 %v787_v7, %v358_v13  ;;  %v416_v21 = vadd.f32 1e-10, %v1369_v14  ;;  %v415_v11 = vld [vmem:[#allocation3 + $0x10] sm:$0xff] }
  0x70   : > { %378 = vst [vmem:[#allocation2 + $0x8] sm:$0xff] %v377_v15  ;;  %v387_v22 = vrot.slane %v386_v16, 4  ;;  %v394_v23 = vadd.f32 %v789_v8, %v393_v17  ;;  %v791_v24 = vsel %vm407_vm2, 1.0, %v1145_v6  ;;  %vm442_vm3 = vcmp.eq.s32.totalorder %v337_v1, 3 }
  0x71   : > { %v353_v26 = vadd.f32 %v352_v19, %v351_v12  ;;  %v360_v27 = vrot.slane %v359_v20, 2  ;;  %v412_v28 = vadd.f32 %v791_v24, %v411_v18  ;;  %v421_v29 = vmul.f32 %v791_v24, %v1369_v14 }
  0x72   : > { %v388_v31 = vadd.f32 %v387_v22, %v386_v16  ;;  %v395_v32 = vrot.slane %v394_v23, 2  ;;  %v428_v33 = vrot.slane %v791_v24, 4  ;;  %898 = vlog2.f32 %v416_v21 }
  0x73   : > { %413 = vst [vmem:[#allocation2 + $0x10] sm:$0xff] %v412_v28  ;;  %v422_v34 = vrot.slane %v421_v29, 4  ;;  %v793_v35 = vsel %vm442_vm3, 1.0, %v1145_v6  ;;  %v451_v36 = vadd.f32 1e-10, %v1374_v25  ;;  %v354_v37 = vrot.slane %v353_v26, 2 }
  0x74   : > { %v429_v38 = vadd.f32 %v791_v24, %v428_v33  ;;  %v447_v39 = vadd.f32 %v793_v35, %v446_v30  ;;  %v456_v40 = vmul.f32 %v793_v35, %v1374_v25  ;;  %v389_v42 = vrot.slane %v388_v31, 2  ;;  %v450_v28 = vld [vmem:[#allocation3 + $0x18] sm:$0xff] }
  0x75   : > { %900 = vlog2.f32 %v451_v36  ;;  %v355_v41 = vadd.f32 %v354_v37, %v353_v26  ;;  %v423_v43 = vadd.f32 %v422_v34, %v421_v29  ;;  %v463_v44 = vrot.slane %v793_v35, 4 }
  0x76   : > { %448 = vst [vmem:[#allocation2 + $0x18] sm:$0xff] %v447_v39  ;;  %v457_v45 = vrot.slane %v456_v40, 4  ;;  %v361_v46 = vadd.f32 %v360_v27, %v359_v20  ;;  %v396_v47 = vadd.f32 %v395_v32, %v394_v23  ;;  %v390_v51 = vadd.f32 %v389_v42, %v388_v31 }
  0x77   : > { %v356_v50 = vrot.slane %v355_v41, 1  ;;  %v424_v52 = vrot.slane %v423_v43, 2  ;;  %vm479_vm6 = vcmask 1042432   ;;  %v430_v53 = vrot.slane %v429_v38, 2 }
  0x78   : > { %v895_v48 = vpop.eup %894  ;;  %v458_v57 = vadd.f32 %v457_v45, %v456_v40  ;;  %v362_v58 = vrot.slane %v361_v46, 1  ;;  %v397_v59 = vrot.slane %v396_v47, 1  ;;  %v391_v62 = vrot.slane %v390_v51, 1 }
  0x79   : > { %v897_v54 = vpop.eup %896  ;;  %v348_v55 = vmul.f32 0.6931472, %v895_v48  ;;  %v357_v61 = vadd.f32 %v356_v50, %v355_v41  ;;  %v425_v63 = vadd.f32 %v424_v52, %v423_v43  ;;  %v431_v9 = vadd.f32 %v430_v53, %v429_v38 }
  0x7a   : > { %v383_v60 = vmul.f32 0.6931472, %v897_v54  ;;  %v459_v1 = vrot.slane %v458_v57, 2  ;;  %v363_v3 = vadd.f32 %v362_v58, %v361_v46  ;;  %v398_v4 = vadd.f32 %v397_v59, %v396_v47 }
  0x7b   : > { %v349_v0 = vadd.f32 %v348_v55, %v345_v49  ;;  %v392_v7 = vadd.f32 %v391_v62, %v390_v51  ;;  %v426_v8 = vrot.slane %v425_v63, 1  ;;  %v464_v13 = vadd.f32 %v793_v35, %v463_v44  ;;  %v497_v62 = vld [vmem:[#allocation2 + $0x8] sm:$0xff] (!%p794_p3) }
  0x7c   : > { %v384_v6 = vadd.f32 %v383_v60, %v380_v56  ;;  %v899_v10 = vpop.eup %898  ;;  %v460_v12 = vadd.f32 %v459_v1, %v458_v57  ;;  %v482_v15 = vsel %vm475_vm4, %v363_v3, %v398_v4  ;;  %v364_v16 = vrot.slane %v1360_v2, 4  ;;  %v494_v60 = vld [vmem:[#allocation2] sm:$0xff] (!%p794_p3)  ;;  %v501_v1 = vld [vmem:[#allocation2 + $0x10] sm:$0xff] (!%p794_p3) }
  0x7d   : > { %350 = vst [vmem:[#allocation3] sm:$0xff] %v349_v0  ;;  %v418_v17 = vmul.f32 0.6931472, %v899_v10  ;;  %v427_v18 = vadd.f32 %v426_v8, %v425_v63  ;;  %v476_v19 = vsel %vm475_vm4, %v357_v61, %v392_v7  ;;  %v432_v20 = vrot.slane %v431_v9, 1  ;;  %v505_v7 = vld [vmem:[#allocation2 + $0x18] sm:$0xff] (!%p794_p3) }
  0x7e   : > { %385 = vst [vmem:[#allocation3 + $0x8] sm:$0xff] %v384_v6  ;;  %v461_v21 = vrot.slane %v460_v12, 1  ;;  %v465_v22 = vrot.slane %v464_v13, 2  ;;  %v365_v23 = vadd.f32 %v364_v16, %v1360_v2  ;;  %v399_v24 = vrot.slane %v1364_v5, 4 }
  0x7f   : > { %v901_v26 = vpop.eup %900  ;;  %v419_v27 = vadd.f32 %v418_v17, %v415_v11  ;;  %v478_v29 = vsel %vm477_vm5, %v476_v19, %v427_v18  ;;  %v433_v30 = vadd.f32 %v432_v20, %v431_v9  ;;  %v434_v31 = vrot.slane %v1369_v14, 4 }
  0x80   : > { %v453_v32 = vmul.f32 0.6931472, %v901_v26  ;;  %v462_v33 = vadd.f32 %v461_v21, %v460_v12  ;;  %v466_v34 = vadd.f32 %v465_v22, %v464_v13  ;;  %v366_v35 = vrot.slane %v365_v23, 2 }
  0x81   : > { %420 = vst [vmem:[#allocation3 + $0x10] sm:$0xff] %v419_v27  ;;  %v400_v36 = vadd.f32 %v1364_v5, %v399_v24  ;;  %v435_v2 = vadd.f32 %v1369_v14, %v434_v31  ;;  %v469_v37 = vrot.slane %v1374_v25, 4  ;;  %v483_v42 = vsel %vm477_vm5, %v482_v15, %v433_v30 }
  0x82   : > { %v454_v38 = vadd.f32 %v453_v32, %v450_v28  ;;  %v480_v39 = vsel %vm479_vm6, %v478_v29, %v462_v33  ;;  %v467_v40 = vrot.slane %v466_v34, 1  ;;  %v367_v41 = vadd.f32 %v366_v35, %v365_v23 }
  0x83   : > { %481 = vst [vmem:[%s310_s14] sm:$0xf] %v480_v39  ;;  %v401_v43 = vrot.slane %v400_v36, 2  ;;  %v436_v44 = vrot.slane %v435_v2, 2  ;;  %v470_v45 = vadd.f32 %v1374_v25, %v469_v37 }
  0x84   : > { %455 = vst [vmem:[#allocation3 + $0x18] sm:$0xff] %v454_v38  ;;  %v468_v5 = vadd.f32 %v467_v40, %v466_v34  ;;  %v368_v46 = vrot.slane %v367_v41, 1  ;;  %v495_v61 = vld [vmem:[#allocation3] sm:$0xff] (!%p794_p3) }
  0x85   : > { %v402_v14 = vadd.f32 %v401_v43, %v400_v36  ;;  %v437_v47 = vadd.f32 %v436_v44, %v435_v2  ;;  %v471_v48 = vrot.slane %v470_v45, 2  ;;  %v496_v63 = vmul.f32 (!%p794_p3), %v495_v61, %v494_v60  ;;  %v498_v0 = vld [vmem:[#allocation3 + $0x8] sm:$0xff] (!%p794_p3) }
  0x86   : > { %v484_v49 = vsel %vm479_vm6, %v483_v42, %v468_v5  ;;  %v369_v50 = vadd.f32 %v368_v46, %v367_v41  ;;  %v499_v4 = vmul.f32 (!%p794_p3), %v498_v0, %v497_v62 }
  0x87   : > { %485 = vst [vmem:[%s317_s15] sm:$0xf] %v484_v49  ;;  %v403_v51 = vrot.slane %v402_v14, 1  ;;  %v438_v52 = vrot.slane %v437_v47, 1  ;;  %v472_v53 = vadd.f32 %v471_v48, %v470_v45 }
  0x88   : > { %493 = sbr.rel (%p794_p3) target bundleno = 157 (0x9d), region = 44  ;;  %v502_v3 = vld [vmem:[#allocation3 + $0x10] sm:$0xff] (!%p794_p3)  ;;  %v500_v9 = vadd.f32 (!%p794_p3), %v499_v4, %v496_v63 }
  0x89   : > { %v404_v54 = vadd.f32 %v403_v51, %v402_v14  ;;  %v439_v55 = vadd.f32 %v438_v52, %v437_v47  ;;  %v473_v56 = vrot.slane %v472_v53, 1  ;;  %v503_v6 = vmul.f32 (!%p794_p3), %v502_v3, %v501_v1 }
  0x8b   : > { %v474_v57 = vadd.f32 %v473_v56, %v472_v53  ;;  %v486_v25 = vsel %vm475_vm4, %v369_v50, %v404_v54  ;;  %v506_v8 = vld [vmem:[#allocation3 + $0x18] sm:$0xff] (!%p794_p3)  ;;  %v504_v11 = vadd.f32 (!%p794_p3), %v503_v6, %v500_v9 }
  0x8c   : > { %v487_v58 = vsel %vm477_vm5, %v486_v25, %v439_v55  ;;  %v507_v10 = vmul.f32 (!%p794_p3), %v506_v8, %v505_v7 }
  0x8d   : > { %v488_v59 = vsel %vm479_vm6, %v487_v58, %v474_v57 }
  0x8e   : > { %489 = vst [vmem:[%s324_s11] sm:$0xf] %v488_v59  ;;  %v508_v12 = vadd.f32 (!%p794_p3), %v507_v10, %v504_v11 }
  0x90   : > { %v509_v13 = vrot.slane %v508_v12, 4 }
  0x92   : > { %v510_v15 = vadd.f32 %v509_v13, %v508_v12 }
  0x94   : > { %v511_v16 = vrot.slane %v510_v15, 2 }
  0x96   : > { %v512_v17 = vadd.f32 %v511_v16, %v510_v15 }
  0x98   : > { %v513_v18 = vrot.slane %v512_v17, 1 }
  0x9a   : > { %v514_v19 = vadd.f32 %v513_v18, %v512_v17 }
  0x9c   : > { %515 = vst [vmem:[#allocation9] sm:$0x1] %v514_v19 }
  0x9d PF: > { %s516_s30 = sand.u32 1, %s1211_s24   ;;  %s1405_s0 = sshll.u32 %s1130_s21, 6 }
  0x9e   : > { %s1411_s12 = scalar_lea.hbm %s1537_s3, %s1405_s0  ;;  %s555_s27 = sshll.u32 %s310_s14, 4  ;;  %s556_s27 = int_to_ptr.vmem [resolvable:$true] %s555_s27 }
  0x9f   : > { %s1415_s29 = scalar_lea.sflag [#allocation11], %s516_s30  ;;  %s962_s28 = scalar_lea.vmem %s556_s27, 64 }
  0xa0   : > { %p963_p11 = scmp.ne.s32.totalorder %s556_s27, %s962_s28  ;;  %p1557_p4 = scmp.ne.s32.totalorder %s1549_s6, 0 }
  0xa1   : > { %s1146_s25 = smov [#allocation10]  }
  0xa2   : > { %p964_p10 = pnand %p963_p11, %p1557_p4  ;;  %s966_s26 = sshll.u32 %s1146_s25, 4  ;;  %s967_s26 = int_to_ptr.vmem [resolvable:$false] %s966_s26 }
  0xa3   : > { %s968_s21 = scalar_lea.vmem %s967_s26, 128  ;;  %p969_p6 = scmp.lt.s32.totalorder %s556_s27, %s967_s26 }
  0xa4   : > { %p965_p12 = pneg %p964_p10  ;;  %p970_p9 = scmp.lt.s32.totalorder %s968_s21, %s962_s28 }
  0xa6   : > { %p971_p1 = por %p970_p9, %p969_p6 }
  0xa8   : > { %p972_p7 = pnand %p971_p1, %p965_p12 }
  0xaa   : > { %975 = shalt.err (!%p972_p7)
}
  0xab   : > { %s976_s17 = scalar_lea.hbm %s1411_s12, 64  ;;  %s980_s9 = scalar_lea.hbm %s1537_s3, 128 }
  0xac   : > { %p977_p2 = scmp.ne.s32.totalorder %s1411_s12, %s976_s17  ;;  %p981_p8 = scmp.lt.u32.totalorder %s1411_s12, %s1537_s3 }
  0xad   : > { %p982_p0 = scmp.lt.u32.totalorder %s980_s9, %s976_s17  ;;  %p984_p11 = scmp.lt.u32.totalorder %s976_s17, %s1411_s12 }
  0xae   : > { %p978_p5 = pnand %p977_p2, %p1557_p4 }
  0xaf   : > { %p983_p3 = por %p982_p0, %p981_p8 }
  0xb0   : > { %p979_p13 = pneg %p978_p5 }
  0xb1   : > { %p985_p10 = por %p984_p11, %p983_p3 }
  0xb3   : > { %p986_p12 = pnand %p985_p10, %p979_p13 }
  0xb5   : > { %989 = shalt.err (!%p986_p12)
}
  0xb6   : > { %812 = dma.vmem_to_hbm [thread:$0]  (%p1557_p4), %s556_s27, 64, %s1411_s12, %s1415_s29  }
  0xb7   : > { %s1147_s28 = smov [#allocation9]   ;;  %s1439_s30 = scalar_lea.hbm %s1538_s4, %s1405_s0 }
  0xb8   : > { %s540_s26 = sshll.u32 %s1147_s28, 4  ;;  %s570_s17 = sshll.u32 %s317_s15, 4  ;;  %s541_s26 = int_to_ptr.vmem [resolvable:$true] %s540_s26  ;;  %s571_s17 = int_to_ptr.vmem [resolvable:$true] %s570_s17 }
  0xb9   : > { %s990_s9 = scalar_lea.vmem %s541_s26, 16  ;;  %p1558_p9 = scmp.eq.s32.totalorder %s1211_s24, 1 }
  0xba   : > { %p991_p6 = scmp.ne.s32.totalorder %s541_s26, %s990_s9  ;;  %s996_s13 = scalar_lea.vmem %s541_s26, 32 }
  0xbb   : > { %p997_p2 = scmp.lt.s32.totalorder %s541_s26, %s541_s26  ;;  %p998_p5 = scmp.lt.s32.totalorder %s996_s13, %s990_s9 }
  0xbc   : > { %p992_p1 = pnand %p991_p6, %p1558_p9 }
  0xbd   : > { %p999_p13 = por %p998_p5, %p997_p2 }
  0xbe   : > { %p993_p7 = pneg %p992_p1 }
  0xc0   : > { %p1000_p8 = pnand %p999_p13, %p993_p7 }
  0xc2   : > { %1003 = shalt.err (!%p1000_p8)
}
  0xc3   : > { %s1004_s25 = scalar_lea.hbm %s1536_s2, 16  ;;  %p1559_p3 = pmov %p1558_p9 }
  0xc4   : > { %p1005_p0 = scmp.ne.s32.totalorder %s1536_s2, %s1004_s25  ;;  %p1010_p12 = scmp.lt.u32.totalorder %s1004_s25, %s1536_s2 }
  0xc6   : > { %p1006_p11 = pnand %p1005_p0, %p1559_p3 }
  0xc8   : > { %p1007_p10 = pneg %p1006_p11 }
  0xca   : > { %p1012_p6 = pnand %p1010_p12, %p1007_p10 }
  0xcc   : > { %1015 = shalt.err (!%p1012_p6)
}
  0xcd   : > { %p1560_p9 = pmov %p1559_p3  ;;  %s1016_s12 = scalar_lea.vmem %s571_s17, 64 }
  0xce   : > { %p1017_p1 = scmp.ne.s32.totalorder %s571_s17, %s1016_s12  ;;  %s1148_s27 = smov [#allocation12]  }
  0xcf   : > { %811 = dma.vmem_to_hbm [thread:$0]  (%p1560_p9), %s541_s26, 16, %s1536_s2, [#allocation6]  }
  0xd0   : > { %p1018_p7 = pnand %p1017_p1, %p1557_p4  ;;  %s1020_s28 = sshll.u32 %s1148_s27, 4  ;;  %s1021_s28 = int_to_ptr.vmem [resolvable:$false] %s1020_s28 }
  0xd1   : > { %s1022_s21 = scalar_lea.vmem %s1021_s28, 128  ;;  %p1023_p5 = scmp.lt.s32.totalorder %s571_s17, %s1021_s28 }
  0xd2   : > { %p1019_p2 = pneg %p1018_p7  ;;  %p1024_p13 = scmp.lt.s32.totalorder %s1022_s21, %s1016_s12 }
  0xd4   : > { %p1025_p8 = por %p1024_p13, %p1023_p5 }
  0xd6   : > { %p1026_p0 = pnand %p1025_p8, %p1019_p2 }
  0xd8   : > { %1029 = shalt.err (!%p1026_p0)
}
  0xd9   : > { %s1030_s26 = scalar_lea.hbm %s1439_s30, 64  ;;  %s1034_s14 = scalar_lea.hbm %s1538_s4, 128 }
  0xda   : > { %p1031_p3 = scmp.ne.s32.totalorder %s1439_s30, %s1030_s26  ;;  %p1035_p12 = scmp.lt.u32.totalorder %s1439_s30, %s1538_s4 }
  0xdb   : > { %p1036_p6 = scmp.lt.u32.totalorder %s1034_s14, %s1030_s26  ;;  %p1038_p1 = scmp.lt.u32.totalorder %s1030_s26, %s1439_s30 }
  0xdc   : > { %p1032_p11 = pnand %p1031_p3, %p1557_p4 }
  0xdd   : > { %p1037_p9 = por %p1036_p6, %p1035_p12 }
  0xde   : > { %p1033_p10 = pneg %p1032_p11 }
  0xdf   : > { %p1039_p7 = por %p1038_p1, %p1037_p9 }
  0xe1   : > { %p1040_p2 = pnand %p1039_p7, %p1033_p10 }
  0xe3   : > { %1043 = shalt.err (!%p1040_p2)
}
  0xe4   : > { %813 = dma.vmem_to_hbm [thread:$0]  (%p1557_p4), %s571_s17, 64, %s1439_s30, %s1415_s29  }
  0xe5   : > { %s1483_s28 = scalar_lea.hbm %s1539_s5, %s1405_s0  ;;  %s585_s21 = sshll.u32 %s324_s11, 4  ;;  %s586_s21 = int_to_ptr.vmem [resolvable:$true] %s585_s21 }
  0xe6   : > { %s527_s26 = scalar_lea.sflag [#allocation14], %s1336_s16  ;;  %s1044_s25 = scalar_lea.vmem %s586_s21, 64 }
  0xe7   : > { %p1045_p5 = scmp.ne.s32.totalorder %s586_s21, %s1044_s25  ;;  %s1149_s15 = smov [#allocation13]  }
  0xe8   : > { %s1048_s14 = sshll.u32 %s1149_s15, 4  ;;  %s1049_s14 = int_to_ptr.vmem [resolvable:$false] %s1048_s14 }
  0xe9   : > { %p1046_p13 = pnand %p1045_p5, %p1557_p4  ;;  %s1050_s9 = scalar_lea.vmem %s1049_s14, 128 }
  0xea   : > { %p1051_p0 = scmp.lt.s32.totalorder %s586_s21, %s1049_s14  ;;  %p1052_p3 = scmp.lt.s32.totalorder %s1050_s9, %s1044_s25 }
  0xeb   : > { %p1047_p8 = pneg %p1046_p13 }
  0xec   : > { %p1053_p11 = por %p1052_p3, %p1051_p0 }
  0xee   : > { %p1054_p10 = pnand %p1053_p11, %p1047_p8 }
  0xf0   : > { %1057 = shalt.err (!%p1054_p10)
}
  0xf1   : > { %s1058_s16 = scalar_lea.hbm %s1483_s28, 64  ;;  %s1062_s0 = scalar_lea.hbm %s1539_s5, 128 }
  0xf2   : > { %p1059_p12 = scmp.ne.s32.totalorder %s1483_s28, %s1058_s16  ;;  %p1063_p1 = scmp.lt.u32.totalorder %s1483_s28, %s1539_s5 }
  0xf3   : > { %p1064_p7 = scmp.lt.u32.totalorder %s1062_s0, %s1058_s16  ;;  %p1066_p5 = scmp.lt.u32.totalorder %s1058_s16, %s1483_s28 }
  0xf4   : > { %p1060_p6 = pnand %p1059_p12, %p1557_p4 }
  0xf5   : > { %p1065_p2 = por %p1064_p7, %p1063_p1 }
  0xf6   : > { %p1061_p9 = pneg %p1060_p6 }
  0xf7   : > { %p1067_p13 = por %p1066_p5, %p1065_p2 }
  0xf9   : > { %p1068_p8 = pnand %p1067_p13, %p1061_p9 }
  0xfb   : > { %1071 = shalt.err (!%p1068_p8)
}
  0xfc   : > { %814 = dma.vmem_to_hbm [thread:$0]  (%p1557_p4), %s586_s21, 64, %s1483_s28, %s527_s26  }
  0xfd   : > { %p1561_p0 = scmp.eq.s32.totalorder %s1211_s24, 1 }
  0xff   : > { %1105 = dma.done.wait (%p1561_p0), [#allocation6], 16   ;;  %p1562_p3 = pmov %p1561_p0 }
 0x101   : > { %1107 = vsyncadd (%p1562_p3), [#allocation6], 4294967280 }
 0x102 PF: > { %s1563_s17 = sadd.s32 4294967294, %s1138_s23   ;;  %p1564_p11 = scmp.ne.s32.totalorder %s1550_s8, 0 }
 0x103   : > { %s601_s13 = sand.u32 1, %s1563_s17   ;;  %p1565_p10 = scmp.ge.s32.totalorder %s1138_s23, 2 }
 0x104   : > { %s602_s12 = scalar_lea.sflag [#allocation11], %s601_s13 }
 0x105   : > { %p828_p12 = pnand %p1565_p10, %p1564_p11 }
 0x107   : > { %1109 = dma.done.wait (!%p828_p12), %s602_s12, 128  }
 0x108   : > { %1111 = vsyncadd (!%p828_p12), %s602_s12, 4294967168  ;;  %s619_s6 = sand.u32 1, %s1118_s18  }
 0x109   : > { %s620_s27 = scalar_lea.sflag [#allocation14], %s619_s6 }
 0x10a   : > { %1113 = dma.done.wait (!%p828_p12), %s620_s27, 64  }
 0x10b   : > { %1115 = vsyncadd (!%p828_p12), %s620_s27, 4294967232  ;;  %s29_s23 = sadd.s32 1, %s1138_s23   ;;  %s1566_s24 = sld [smem:[#allocation20_spill]] }
 0x10c   : > { %p26_p4 = scmp.ge.s32.totalorder %s29_s23, 4   ;;  %s1567_s18 = smov %s1122_s19 }
 0x10d   : > { %s1568_s19 = smov %s1126_s20  ;;  %s1569_s20 = smov %s1244_s7 }
 0x10e   : > { %s1570_s21 = smov %s1134_s22  ;;  %28 = sbr.rel (!%p26_p4) target bundleno = 13 (0xd), region = 145 }
 0x111   : > { %s1571_s22 = smov %s1566_s24 }
 0x115   :  { %625 = vsyncpa [#allocation5], 1 }
 0x116   :  { %627 = vsyncpa [#allocation5 + $0x1], 1 }
 0x117   :  { %628 = vsyncpa [#allocation8], 1 }
 0x118   :  { %630 = vsyncpa [#allocation8 + $0x1], 1 }
 0x119   :  { %631 = vsyncpa [#allocation6], 1 }
 0x11a   :  { %633 = vsyncpa [#allocation6 + $0x1], 1 }
 0x11b   :  { %634 = vsyncpa [#allocation11], 1 }
 0x11c   :  { %636 = vsyncpa [#allocation11 + $0x1], 1 }
 0x11d   :  { %637 = vsyncpa [#allocation14], 1 }
 0x11e   :  { %639 = vsyncpa [#allocation14 + $0x1], 1 }

</bundles_post_ra>
